<compile_context>
chip_gen: v6e
topology: v6e:2x2x1
jax: 0.10.0
libtpu: 0.0.40
codegen_flags: <defaults>
</compile_context>

<pallas_src>
import math

import jax
import jax.numpy as jnp
from jax.experimental import pallas as pl
from jax.experimental.pallas import tpu as pltpu


# ----------------------------- fused kernel -------------------------------- #

def _disc_fused_kernel(x_ref, wc_ref, bc_ref, w2_ref, b2_ref, w3_ref, b3_ref, o_ref):
    # x_ref : (M, S*D)      wc_ref: (S*D, 256)   bc_ref: (1, 256)
    # w2_ref: (256, 64)     b2_ref: (1, 64)
    # w3_ref: (1, 64)       b3_ref: (1, 1)
    # o_ref : (M, 128)  — per-row sigmoid broadcast across lanes (lane-dense store)

    # (folded dimred + fc1) -> relu
    h1 = jnp.dot(x_ref[...], wc_ref[...], preferred_element_type=jnp.float32) + bc_ref[...]
    h1 = jnp.maximum(h1, 0.0)

    # fc2 -> relu
    h2 = jnp.dot(h1, w2_ref[...], preferred_element_type=jnp.float32) + b2_ref[...]
    h2 = jnp.maximum(h2, 0.0)

    # fc3 (64 -> 1) on VPU + XLU lane reduction (avoid N=1 MXU matmul / masked stores)
    h3 = jnp.sum(h2 * w3_ref[...], axis=-1, keepdims=True) + b3_ref[...]   # (M, 1)
    y = jax.nn.sigmoid(h3)

    # lane-dense output: broadcast the per-row scalar across all 128 lanes
    o_ref[...] = jnp.broadcast_to(y, o_ref.shape)


# ------------------------- parameter preparation --------------------------- #

def fold_params(params, seq_len):
    """Fold dimensionality_reduction into fc1 (no nonlinearity between them).

    W_comb[s*D:(s+1)*D, :] = w_dr @ w1[s*l:(s+1)*l, :]        -> (S*D, 256)
    b_comb                 = b1 + sum_s b_dr @ w1[s*l:(s+1)*l] -> (1, 256)
    """
    w_dr, b_dr = params["w_dr"], params["b_dr"]          # (D, l), (1, l)
    w1, b1 = params["w1"], params["b1"]                  # (S*l, 256), (1, 256)
    D, l = w_dr.shape
    H = w1.shape[1]
    w1_r = w1.reshape(seq_len, l, H)                     # (S, l, 256)

    hi = jax.lax.Precision.HIGHEST
    w_comb = jnp.einsum("dl,slh->sdh", w_dr, w1_r, precision=hi).reshape(seq_len * D, H)
    b_comb = b1 + jnp.einsum("l,slh->h", b_dr[0], w1_r, precision=hi)[None, :]

    return {
        "w_comb": w_comb, "b_comb": b_comb,
        "w2": params["w2"], "b2": params["b2"],
        "w3_row": params["w3"].T,                        # (1, 64) for VPU row-dot
        "b3": params["b3"],                              # (1, 1)
    }


# ----------------------------- wrapper -------------------------------------- #

def discriminator_forward(x, folded):
    """x: (B, S, D) float32 -> (B, 1) float32, using one fused Pallas kernel."""
    B, S, D = x.shape
    K = S * D
    H = folded["w_comb"].shape[1]
    OUT_LANES = 128

    # Pad the batch (M) dimension to a sublane multiple so vregs are full.
    M = max(8, ((B + 7) // 8) * 8)
    x_flat = x.reshape(B, K)
    if M != B:
        x_flat = jnp.pad(x_flat, ((0, M - B), (0, 0)))

    # VMEM footprint (bytes): activations + weights + lane-dense output.
    footprint = 4 * (M * K + K * H + H + H * 64 + 64 + 64 + 1 + M * OUT_LANES)
    vmem_limit = max(8 * 1024 * 1024, 4 * footprint)     # generous headroom

    vmem = pl.BlockSpec(memory_space=pltpu.MemorySpace.VMEM)
    out = pl.pallas_call(
        _disc_fused_kernel,
        out_shape=jax.ShapeDtypeStruct((M, OUT_LANES), jnp.float32),
        in_specs=[vmem] * 7,
        out_specs=vmem,
        compiler_params=pltpu.CompilerParams(vmem_limit_bytes=vmem_limit),
    )(
        x_flat,
        folded["w_comb"], folded["b_comb"],
        folded["w2"], folded["b2"],
        folded["w3_row"], folded["b3"],
    )
    # TODO(synk): if B*S or D ever scale, add a ("parallel",) grid over rows so the
    # activation tile fits v7x's 64 MiB VMEM and shards across its 2 TensorCores.
    return out[:B, :1]


# ------------------------- deterministic params ----------------------------- #

def init_params(key, seq_len, dim, l):
    """PyTorch-style uniform(-1/sqrt(fan_in), 1/sqrt(fan_in)) init, weights as (in, out)."""
    def linear(k, fan_in, fan_out):
        kw, kb = jax.random.split(k)
        bound = 1.0 / math.sqrt(fan_in)
        w = jax.random.uniform(kw, (fan_in, fan_out), jnp.float32, -bound, bound)
        b = jax.random.uniform(kb, (1, fan_out), jnp.float32, -bound, bound)
        return w, b

    k0, k1, k2, k3 = jax.random.split(key, 4)
    w_dr, b_dr = linear(k0, dim, l)
    w1, b1 = linear(k1, seq_len * l, 256)
    w2, b2 = linear(k2, 256, 64)
    w3, b3 = linear(k3, 64, 1)
    return {
        "w_dr": w_dr, "b_dr": b_dr,
        "w1": w1, "b1": b1,
        "w2": w2, "b2": b2,
        "w3": w3, "b3": b3,
    }


# pure-JAX reference following the PyTorch module exactly (unfolded math)
def _ref_forward(x, p):
    B = x.shape[0]
    y = x @ p["w_dr"] + p["b_dr"]
    y = y.reshape(B, -1)
    y = jnp.maximum(y @ p["w1"] + p["b1"], 0.0)
    y = jnp.maximum(y @ p["w2"] + p["b2"], 0.0)
    y = y @ p["w3"] + p["b3"]
    return jax.nn.sigmoid(y)


# ------------------------------- main ---------------------------------------- #

if __name__ == "__main__":
    # Small shapes consistent with the module: batch=2, seq_len=8, dim=32, l=16.
    B, SEQ_LEN, DIM, L = 2, 8, 32, 16

    key = jax.random.PRNGKey(0)
    k_params, k_x = jax.random.split(key)

    params = init_params(k_params, SEQ_LEN, DIM, L)
    folded = fold_params(params, SEQ_LEN)
    x = jax.random.normal(k_x, (B, SEQ_LEN, DIM), jnp.float32)

    out = discriminator_forward(x, folded)
    out = jax.block_until_ready(out)

    ref = _ref_forward(x, params)
    assert out.shape == (B, 1)
    # Weight folding reassociates one matmul; differences are at fp32-rounding level.
    assert jnp.allclose(out, ref, atol=1e-4, rtol=1e-4)

    print("KERNEL_OK")
</pallas_src>

<mosaic_0001>
module attributes {stable_mosaic.version = 11 : i64} {
  func.func @_disc_fused_kernel(%arg0: memref<8x256xf32, #tpu.memory_space<vmem>>, %arg1: memref<256x256xf32, #tpu.memory_space<vmem>>, %arg2: memref<1x256xf32, #tpu.memory_space<vmem>>, %arg3: memref<256x64xf32, #tpu.memory_space<vmem>>, %arg4: memref<1x64xf32, #tpu.memory_space<vmem>>, %arg5: memref<1x64xf32, #tpu.memory_space<vmem>>, %arg6: memref<1x1xf32, #tpu.memory_space<vmem>>, %arg7: memref<8x128xf32, #tpu.memory_space<vmem>>) attributes {dimension_semantics = [], scalar_prefetch = 0 : i64, scratch_operands = 0 : i64, tpu.core_type = #tpu.core_type<tc>} {
    %c0 = arith.constant 0 : index
    %c0_0 = arith.constant 0 : index
    %0 = vector.load %arg0[%c0, %c0_0] : memref<8x256xf32, #tpu.memory_space<vmem>>, vector<8x256xf32>
    %c0_1 = arith.constant 0 : index
    %c0_2 = arith.constant 0 : index
    %1 = vector.load %arg1[%c0_1, %c0_2] : memref<256x256xf32, #tpu.memory_space<vmem>>, vector<256x256xf32>
    %cst = arith.constant dense<0.000000e+00> : vector<8x256xf32>
    %2 = tpu.matmul %0, %1, %cst {dimension_numbers = #tpu.dot_dimension_numbers<[1], [0], [0], [1], [0, 0, 1, 1], [], []>} : vector<8x256xf32>, vector<256x256xf32>, vector<8x256xf32> -> vector<8x256xf32>
    %c0_3 = arith.constant 0 : index
    %c0_4 = arith.constant 0 : index
    %3 = vector.load %arg2[%c0_3, %c0_4] : memref<1x256xf32, #tpu.memory_space<vmem>>, vector<1x256xf32>
    %4 = vector.broadcast %3 : vector<1x256xf32> to vector<8x256xf32>
    %5 = arith.addf %2, %4 : vector<8x256xf32>
    %cst_5 = arith.constant 0.000000e+00 : f32
    %6 = vector.broadcast %cst_5 : f32 to vector<8x256xf32>
    %7 = arith.maximumf %5, %6 : vector<8x256xf32>
    %c0_6 = arith.constant 0 : index
    %c0_7 = arith.constant 0 : index
    %8 = vector.load %arg3[%c0_6, %c0_7] : memref<256x64xf32, #tpu.memory_space<vmem>>, vector<256x64xf32>
    %cst_8 = arith.constant dense<0.000000e+00> : vector<8x64xf32>
    %9 = tpu.matmul %7, %8, %cst_8 {dimension_numbers = #tpu.dot_dimension_numbers<[1], [0], [0], [1], [0, 0, 1, 1], [], []>} : vector<8x256xf32>, vector<256x64xf32>, vector<8x64xf32> -> vector<8x64xf32>
    %c0_9 = arith.constant 0 : index
    %c0_10 = arith.constant 0 : index
    %10 = vector.load %arg4[%c0_9, %c0_10] : memref<1x64xf32, #tpu.memory_space<vmem>>, vector<1x64xf32>
    %11 = vector.broadcast %10 : vector<1x64xf32> to vector<8x64xf32>
    %12 = arith.addf %9, %11 : vector<8x64xf32>
    %cst_11 = arith.constant 0.000000e+00 : f32
    %13 = vector.broadcast %cst_11 : f32 to vector<8x64xf32>
    %14 = arith.maximumf %12, %13 : vector<8x64xf32>
    %c0_12 = arith.constant 0 : index
    %c0_13 = arith.constant 0 : index
    %15 = vector.load %arg5[%c0_12, %c0_13] : memref<1x64xf32, #tpu.memory_space<vmem>>, vector<1x64xf32>
    %16 = vector.broadcast %15 : vector<1x64xf32> to vector<8x64xf32>
    %17 = arith.mulf %14, %16 : vector<8x64xf32>
    %cst_14 = arith.constant dense<0.000000e+00> : vector<8xf32>
    %18 = vector.multi_reduction <add>, %17, %cst_14 [1] : vector<8x64xf32> to vector<8xf32>
    %19 = vector.shape_cast %18 : vector<8xf32> to vector<8x1xf32>
    %c0_15 = arith.constant 0 : index
    %c0_16 = arith.constant 0 : index
    %20 = vector.load %arg6[%c0_15, %c0_16] : memref<1x1xf32, #tpu.memory_space<vmem>>, vector<1x1xf32>
    %21 = vector.broadcast %20 : vector<1x1xf32> to vector<8x1xf32>
    %22 = arith.addf %19, %21 : vector<8x1xf32>
    %23 = arith.negf %22 : vector<8x1xf32>
    %24 = math.exp %23 : vector<8x1xf32>
    %cst_17 = arith.constant 1.000000e+00 : f32
    %25 = vector.broadcast %cst_17 : f32 to vector<8x1xf32>
    %26 = arith.addf %25, %24 : vector<8x1xf32>
    %27 = arith.divf %25, %26 : vector<8x1xf32>
    %28 = vector.shape_cast %27 : vector<8x1xf32> to vector<8x1xf32>
    %29 = vector.broadcast %28 : vector<8x1xf32> to vector<8x128xf32>
    %c0_18 = arith.constant 0 : index
    %c0_19 = arith.constant 0 : index
    %30 = vector.load %arg7[%c0_18, %c0_19] : memref<8x128xf32, #tpu.memory_space<vmem>>, vector<8x128xf32>
    tpu.vector_store %arg7[%c0_18, %c0_19], %29 {strides = array<i32>} : memref<8x128xf32, #tpu.memory_space<vmem>>, vector<8x128xf32>,
    return
  }
}

</mosaic_0001>

<bundles_post_ra>
// kernel: tpu_custom_call.1
= control target key start
LH: loop header
LB: loop body
LE: loop exit
PB: predicated region body
PF: predicated region fallthrough
CT: control target
= control target key end

     0   :  { %s609_s0 = inlined_call_operand.vmem [shape: f32[8,256], index: 0, kind: input, shape index: {}]   ;;  %s610_s1 = inlined_call_operand.hbm [shape: f32[256,256], index: 1, kind: input, shape index: {}]   ;;  %s611_s2 = inlined_call_operand.vmem [shape: f32[1,256], index: 2, kind: input, shape index: {}]   ;;  %s612_s3 = inlined_call_operand.vmem [shape: f32[256,64], index: 3, kind: input, shape index: {}]   ;;  %s613_s4 = inlined_call_operand.vmem [shape: f32[1,64], index: 4, kind: input, shape index: {}]   ;;  %s614_s5 = inlined_call_operand.vmem [shape: f32[1,64], index: 5, kind: input, shape index: {}]   ;;  %s615_s6 = inlined_call_operand.<no memory space> [shape: f32[1,1], index: 6, kind: input, shape index: {}]   ;;  %s616_s7 = inlined_call_operand.hbm [shape: f32[8,128], index: 7, kind: output, shape index: {}]  }
   0x1   :  { %v12_v0 = vstv %s615_s6 }
   0x2   :  { %13 = vst [vmem:[#allocation2] sm:$0x1] %v12_v0 }
   0x3   :  { %14 = vsyncpa [#allocation4], 0 }
   0x4   :  { %15 = vsyncpa [#allocation5], 0  ;;  %s444_s26 = smov [#allocation3]  }
   0x5   :  { %s23_s27 = sshll.u32 %s444_s26, 4  ;;  %s24_s27 = int_to_ptr.vmem [resolvable:$true] %s23_s27 }
   0x6   :  { %s408_s28 = scalar_lea.vmem %s24_s27, 8192  ;;  %p413_p1 = scmp.lt.s32.totalorder %s24_s27, %s24_s27 }
   0x7   :  { %p409_p0 = scmp.ne.s32.totalorder %s24_s27, %s408_s28  ;;  %p414_p2 = scmp.lt.s32.totalorder %s408_s28, %s408_s28 }
   0x9   :  { %p415_p3 = por %p414_p2, %p413_p1 }
   0xb   :  { %p416_p4 = pnand %p415_p3, %p409_p0 }
   0xd   :  { %419 = shalt.err (!%p416_p4)
}
   0xe   :  { %s445_s29 = smov 256   ;;  %s446_s30 = smov 16  }
   0xf   :  { %29 = dma.hbm_to_vmem [thread:$0]  %s610_s1, 8192, %s24_s27, [#allocation4], %s445_s29, %s445_s29, %s446_s30  }
  0x10   :  { %440 = dma.done.wait [#allocation4], 8192  }
  0x11   :  { %441 = vsyncadd [#allocation4], 4294959104  ;;  %v76_v1 = vld [vmem:[#allocation3 + $0xf8] sm:$0xff]  ;;  %v75_v2 = vld [vmem:[#allocation3 + $0xf0] sm:$0xff]  ;;  %vm312_vm0 = vcmask 523264  }
  0x12   :  { %v74_v3 = vld [vmem:[#allocation3 + $0xe8] sm:$0xff]  ;;  %121 = vmatprep.subr.mxu0 %v76_v1  ;;  %v73_v4 = vld [vmem:[#allocation3 + $0xe0] sm:$0xff]  ;;  %v72_v5 = vld [vmem:[#allocation3 + $0xd8] sm:$0xff] }
  0x13   :  { %122 = vmatpush1.msra.mxu0 %v75_v2  ;;  %v71_v6 = vld [vmem:[#allocation3 + $0xd0] sm:$0xff]  ;;  %v70_v7 = vld [vmem:[#allocation3 + $0xc8] sm:$0xff]  ;;  %v69_v8 = vld [vmem:[#allocation3 + $0xc0] sm:$0xff] }
  0x14   :  { %123 = vmatprep.subr.mxu0 %v74_v3  ;;  %v68_v9 = vld [vmem:[#allocation3 + $0xb8] sm:$0xff]  ;;  %v67_v10 = vld [vmem:[#allocation3 + $0xb0] sm:$0xff]  ;;  %v66_v11 = vld [vmem:[#allocation3 + $0xa8] sm:$0xff] }
  0x15   :  { %124 = vmatpush1.msra.mxu0 %v73_v4  ;;  %v65_v12 = vld [vmem:[#allocation3 + $0xa0] sm:$0xff]  ;;  %v64_v13 = vld [vmem:[#allocation3 + $0x98] sm:$0xff]  ;;  %v63_v14 = vld [vmem:[#allocation3 + $0x90] sm:$0xff] }
  0x16   :  { %125 = vmatprep.subr.mxu0 %v72_v5  ;;  %v62_v15 = vld [vmem:[#allocation3 + $0x88] sm:$0xff]  ;;  %v61_v16 = vld [vmem:[#allocation3 + $0x80] sm:$0xff]  ;;  %v60_v17 = vld [vmem:[#allocation3 + $0x78] sm:$0xff] }
  0x17   :  { %126 = vmatpush1.msra.mxu0 %v71_v6  ;;  %v59_v18 = vld [vmem:[#allocation3 + $0x70] sm:$0xff]  ;;  %v58_v19 = vld [vmem:[#allocation3 + $0x68] sm:$0xff]  ;;  %v57_v20 = vld [vmem:[#allocation3 + $0x60] sm:$0xff] }
  0x18   :  { %127 = vmatprep.subr.mxu0 %v70_v7  ;;  %v56_v21 = vld [vmem:[#allocation3 + $0x58] sm:$0xff]  ;;  %v55_v22 = vld [vmem:[#allocation3 + $0x50] sm:$0xff]  ;;  %v54_v23 = vld [vmem:[#allocation3 + $0x48] sm:$0xff] }
  0x19   :  { %128 = vmatpush1.msra.mxu0 %v69_v8  ;;  %v53_v24 = vld [vmem:[#allocation3 + $0x40] sm:$0xff]  ;;  %v52_v25 = vld [vmem:[#allocation3 + $0x38] sm:$0xff]  ;;  %v224_v29 = vld [vmem:[%s612_s3 + $0xf0] sm:$0xff] }
  0x1a   :  { %129 = vmatprep.subr.mxu0 %v68_v9  ;;  %v44_v26 = vld [vmem:[%s609_s0 + $0x8] sm:$0xff]  ;;  %v225_v27 = vld [vmem:[%s612_s3 + $0xf8] sm:$0xff]  ;;  %v208_v31 = vld [vmem:[%s612_s3 + $0x70] sm:$0xff] }
  0x1b   :  { %130 = vmatpush1.msra.mxu0 %v67_v10  ;;  %185 = vmatprep.mubr.f32.mxu0 %v44_v26  ;;  %v209_v28 = vld [vmem:[%s612_s3 + $0x78] sm:$0xff]  ;;  %v50_v32 = vld [vmem:[#allocation3 + $0x28] sm:$0xff]  ;;  %v49_v34 = vld [vmem:[#allocation3 + $0x20] sm:$0xff] }
  0x1c   :  { %131 = vmatprep.subr.mxu0 %v66_v11  ;;  %v51_v30 = vld [vmem:[#allocation3 + $0x30] sm:$0xff]  ;;  %355 = vmatprep.subr.mxu1 %v225_v27  ;;  %v223_v33 = vld [vmem:[%s612_s3 + $0xe8] sm:$0xff]  ;;  %v48_v36 = vld [vmem:[#allocation3 + $0x18] sm:$0xff] }
  0x1d   :  { %132 = vmatpush1.msra.mxu0 %v65_v12  ;;  %356 = vmatpush3.msra.mxu1 %v209_v28  ;;  %v207_v35 = vld [vmem:[%s612_s3 + $0x68] sm:$0xff]  ;;  %v222_v37 = vld [vmem:[%s612_s3 + $0xe0] sm:$0xff]  ;;  %v47_v38 = vld [vmem:[#allocation3 + $0x10] sm:$0xff] }
  0x1e   :  { %133 = vmatprep.subr.mxu0 %v64_v13  ;;  %357 = vmatprep.subr.mxu1 %v224_v29  ;;  %v206_v39 = vld [vmem:[%s612_s3 + $0x60] sm:$0xff]  ;;  %v46_v40 = vld [vmem:[#allocation3 + $0x8] sm:$0xff]  ;;  %v221_v41 = vld [vmem:[%s612_s3 + $0xd8] sm:$0xff] }
  0x1f   :  { %134 = vmatpush1.msra.mxu0 %v63_v14  ;;  %358 = vmatpush3.msra.mxu1 %v208_v31  ;;  %v45_v42 = vld [vmem:[#allocation3] sm:$0xff]  ;;  %v205_v43 = vld [vmem:[%s612_s3 + $0x58] sm:$0xff]  ;;  %v220_v45 = vld [vmem:[%s612_s3 + $0xd0] sm:$0xff] }
  0x20   :  { %135 = vmatprep.subr.mxu0 %v62_v15  ;;  %359 = vmatprep.subr.mxu1 %v223_v33  ;;  %v108_v44 = vld [vmem:[#allocation3 + $0x1f8] sm:$0xff]  ;;  %v107_v46 = vld [vmem:[#allocation3 + $0x1f0] sm:$0xff]  ;;  %v106_v48 = vld [vmem:[#allocation3 + $0x1e8] sm:$0xff] }
  0x21   :  { %136 = vmatpush1.msra.mxu0 %v61_v16  ;;  %360 = vmatpush3.msra.mxu1 %v207_v35  ;;  %v204_v47 = vld [vmem:[%s612_s3 + $0x50] sm:$0xff]  ;;  %v219_v49 = vld [vmem:[%s612_s3 + $0xc8] sm:$0xff]  ;;  %v104_v52 = vld [vmem:[#allocation3 + $0x1d8] sm:$0xff]  ;;  %v111_v35 = vlaneseq }
  0x22   :  { %137 = vmatprep.subr.mxu0 %v60_v17  ;;  %361 = vmatprep.subr.mxu1 %v222_v37  ;;  %v105_v50 = vld [vmem:[#allocation3 + $0x1e0] sm:$0xff]  ;;  %v103_v54 = vld [vmem:[#allocation3 + $0x1d0] sm:$0xff]  ;;  %v102_v56 = vld [vmem:[#allocation3 + $0x1c8] sm:$0xff] }
  0x23   :  { %138 = vmatpush1.msra.mxu0 %v59_v18  ;;  %362 = vmatpush3.msra.mxu1 %v206_v39  ;;  %v203_v51 = vld [vmem:[%s612_s3 + $0x48] sm:$0xff]  ;;  %v218_v53 = vld [vmem:[%s612_s3 + $0xc0] sm:$0xff]  ;;  %v217_v57 = vld [vmem:[%s612_s3 + $0xb8] sm:$0xff] }
  0x24   :  { %139 = vmatprep.subr.mxu0 %v58_v19  ;;  %363 = vmatprep.subr.mxu1 %v221_v41  ;;  %v202_v55 = vld [vmem:[%s612_s3 + $0x40] sm:$0xff]  ;;  %v201_v59 = vld [vmem:[%s612_s3 + $0x38] sm:$0xff]  ;;  %v216_v61 = vld [vmem:[%s612_s3 + $0xb0] sm:$0xff] }
  0x25   :  { %140 = vmatpush1.msra.mxu0 %v57_v20  ;;  %364 = vmatpush3.msra.mxu1 %v205_v43  ;;  %v101_v58 = vld [vmem:[#allocation3 + $0x1c0] sm:$0xff]  ;;  %v100_v60 = vld [vmem:[#allocation3 + $0x1b8] sm:$0xff]  ;;  %v99_v62 = vld [vmem:[#allocation3 + $0x1b0] sm:$0xff] }
  0x26   :  { %141 = vmatprep.subr.mxu0 %v56_v21  ;;  %365 = vmatprep.subr.mxu1 %v220_v45  ;;  %v200_v63 = vld [vmem:[%s612_s3 + $0x30] sm:$0xff]  ;;  %v215_v1 = vld [vmem:[%s612_s3 + $0xa8] sm:$0xff]  ;;  %v96_v4 = vld [vmem:[#allocation3 + $0x198] sm:$0xff] }
  0x27   :  { %142 = vmatpush1.msra.mxu0 %v55_v22  ;;  %366 = vmatpush3.msra.mxu1 %v204_v47  ;;  %v98_v0 = vld [vmem:[#allocation3 + $0x1a8] sm:$0xff]  ;;  %v97_v2 = vld [vmem:[#allocation3 + $0x1a0] sm:$0xff]  ;;  %v95_v6 = vld [vmem:[#allocation3 + $0x190] sm:$0xff] }
  0x28   :  { %143 = vmatprep.subr.mxu0 %v54_v23  ;;  %367 = vmatprep.subr.mxu1 %v219_v49  ;;  %v199_v3 = vld [vmem:[%s612_s3 + $0x28] sm:$0xff]  ;;  %v214_v5 = vld [vmem:[%s612_s3 + $0xa0] sm:$0xff]  ;;  %v91_v11 = vld [vmem:[#allocation3 + $0x170] sm:$0xff] }
  0x29   :  { %144 = vmatpush1.msra.mxu0 %v53_v24  ;;  %368 = vmatpush3.msra.mxu1 %v203_v51  ;;  %v198_v7 = vld [vmem:[%s612_s3 + $0x20] sm:$0xff]  ;;  %v94_v8 = vld [vmem:[#allocation3 + $0x188] sm:$0xff]  ;;  %v87_v15 = vld [vmem:[#allocation3 + $0x150] sm:$0xff] }
  0x2a   :  { %145 = vmatprep.subr.mxu0 %v52_v25  ;;  %369 = vmatprep.subr.mxu1 %v218_v53  ;;  %v93_v9 = vld [vmem:[#allocation3 + $0x180] sm:$0xff]  ;;  %v92_v10 = vld [vmem:[#allocation3 + $0x178] sm:$0xff]  ;;  %v90_v12 = vld [vmem:[#allocation3 + $0x168] sm:$0xff] }
  0x2b   :  { %146 = vmatpush1.msra.mxu0 %v51_v30  ;;  %370 = vmatpush3.msra.mxu1 %v202_v55  ;;  %v89_v13 = vld [vmem:[#allocation3 + $0x160] sm:$0xff]  ;;  %v88_v14 = vld [vmem:[#allocation3 + $0x158] sm:$0xff]  ;;  %v86_v16 = vld [vmem:[#allocation3 + $0x148] sm:$0xff] }
  0x2c   :  { %147 = vmatprep.subr.mxu0 %v50_v32  ;;  %371 = vmatprep.subr.mxu1 %v217_v57  ;;  %v85_v17 = vld [vmem:[#allocation3 + $0x140] sm:$0xff]  ;;  %v84_v18 = vld [vmem:[#allocation3 + $0x138] sm:$0xff]  ;;  %v83_v19 = vld [vmem:[#allocation3 + $0x130] sm:$0xff]  ;;  %v447_v57 = vmov 0  }
  0x2d   :  { %148 = vmatpush1.msra.mxu0 %v49_v34  ;;  %372 = vmatpush3.msra.mxu1 %v201_v59  ;;  %v82_v20 = vld [vmem:[#allocation3 + $0x128] sm:$0xff]  ;;  %v81_v21 = vld [vmem:[#allocation3 + $0x120] sm:$0xff]  ;;  %v80_v22 = vld [vmem:[#allocation3 + $0x118] sm:$0xff] }
  0x2e   :  { %149 = vmatprep.subr.mxu0 %v48_v36  ;;  %373 = vmatprep.subr.mxu1 %v216_v61  ;;  %v79_v23 = vld [vmem:[#allocation3 + $0x110] sm:$0xff]  ;;  %v78_v24 = vld [vmem:[#allocation3 + $0x108] sm:$0xff]  ;;  %v77_v25 = vld [vmem:[#allocation3 + $0x100] sm:$0xff]  ;;  %v112_v36 = vshrl.u32 %v111_v35, 7 }
  0x2f   :  { %150 = vmatpush1.msra.mxu0 %v47_v38  ;;  %374 = vmatpush3.msra.mxu1 %v200_v63  ;;  %v43_v26 = vld [vmem:[%s609_s0] sm:$0xff]  ;;  %v213_v27 = vld [vmem:[%s612_s3 + $0x98] sm:$0xff]  ;;  %v212_v29 = vld [vmem:[%s612_s3 + $0x90] sm:$0xff] }
  0x30   :  { %151 = vmatprep.subr.mxu0 %v46_v40  ;;  %375 = vmatprep.subr.mxu1 %v215_v1  ;;  %v197_v28 = vld [vmem:[%s612_s3 + $0x18] sm:$0xff]  ;;  %v196_v30 = vld [vmem:[%s612_s3 + $0x10] sm:$0xff]  ;;  %v211_v31 = vld [vmem:[%s612_s3 + $0x88] sm:$0xff]  ;;  %v113_v37 = vsub.s32 0, %v112_v36  ;;  %v117_v39 = vsub.s32 1, %v112_v36 }
  0x31   :  { %152 = vmatpush1.msra.mxu0 %v45_v42  ;;  %376 = vmatpush3.msra.mxu1 %v199_v3  ;;  %v195_v32 = vld [vmem:[%s612_s3 + $0x8] sm:$0xff]  ;;  %v210_v33 = vld [vmem:[%s612_s3 + $0x80] sm:$0xff] }
  0x32   :  { %153 = vmatprep.subr.mxu0 %v108_v44  ;;  %377 = vmatprep.subr.mxu1 %v214_v5  ;;  %v194_v34 = vld [vmem:[%s612_s3] sm:$0xff] }
  0x33   :  { %154 = vmatpush2.msra.mxu0 %v107_v46  ;;  %378 = vmatpush3.msra.mxu1 %v198_v7  ;;  %v109_v38 = vld [vmem:[%s611_s2] sm:$0x3] }
  0x34   :  { %155 = vmatprep.subr.mxu0 %v106_v48  ;;  %379 = vmatprep.subr.mxu1 %v213_v27  ;;  %v114_v40 = vrot.slane %v109_v38, %v113_v37  ;;  %v118_v41 = vrot.slane %v109_v38, %v117_v39  ;;  %v351_v49 = vld [vmem:[%s613_s4] ss:$0 sm:$0xff]  ;;  %s448_s4 = smov [#allocation6]  }
  0x35   :  { %156 = vmatpush2.msra.mxu0 %v105_v50  ;;  %380 = vmatpush3.msra.mxu1 %v197_v28  ;;  %v352_v53 = vld [vmem:[%s614_s5] ss:$0 sm:$0xff]  ;;  %s342_s29 = sshll.u32 %s448_s4, 4  ;;  %s343_s29 = int_to_ptr.vmem [resolvable:$true] %s342_s29 }
  0x36   :  { %157 = vmatprep.subr.mxu0 %v104_v52  ;;  %381 = vmatprep.subr.mxu1 %v212_v29  ;;  %s420_s5 = scalar_lea.vmem %s343_s29, 128  ;;  %p425_p6 = scmp.lt.s32.totalorder %s343_s29, %s343_s29 }
  0x37   :  { %158 = vmatpush2.msra.mxu0 %v103_v54  ;;  %382 = vmatpush3.msra.mxu1 %v196_v30  ;;  %p421_p5 = scmp.ne.s32.totalorder %s343_s29, %s420_s5  ;;  %p426_p7 = scmp.lt.s32.totalorder %s420_s5, %s420_s5 }
  0x38   :  { %159 = vmatprep.subr.mxu0 %v102_v56  ;;  %383 = vmatprep.subr.mxu1 %v211_v31 }
  0x39   :  { %160 = vmatpush2.msra.mxu0 %v101_v58  ;;  %384 = vmatpush3.msra.mxu1 %v195_v32  ;;  %v353_v58 = vld [vmem:[#allocation2] ss:$0 sm:$0xff]  ;;  %p427_p8 = por %p426_p7, %p425_p6 }
  0x3a   :  { %161 = vmatprep.subr.mxu0 %v100_v60  ;;  %385 = vmatprep.subr.mxu1 %v210_v33 }
  0x3b   :  { %162 = vmatpush2.msra.mxu0 %v99_v62  ;;  %386 = vmatpush3.msra.mxu1 %v194_v34  ;;  %p428_p9 = pnand %p427_p8, %p421_p5 }
  0x3c   :  { %163 = vmatprep.subr.mxu0 %v98_v0  ;;  %395 = vset.pattern.permute.xlu0 %v447_v57 }
  0x3d   :  { %164 = vmatpush2.msra.mxu0 %v97_v2 }
  0x3e   :  { %165 = vmatprep.subr.mxu0 %v96_v4 }
  0x3f   :  { %166 = vmatpush2.msra.mxu0 %v95_v6 }
  0x40   :  { %167 = vmatprep.subr.mxu0 %v94_v8 }
  0x41   :  { %168 = vmatpush2.msra.mxu0 %v93_v9 }
  0x42   :  { %169 = vmatprep.subr.mxu0 %v92_v10 }
  0x43   :  { %170 = vmatpush2.msra.mxu0 %v91_v11 }
  0x44   :  { %171 = vmatprep.subr.mxu0 %v90_v12 }
  0x45   :  { %172 = vmatpush2.msra.mxu0 %v89_v13 }
  0x46   :  { %173 = vmatprep.subr.mxu0 %v88_v14 }
  0x47   :  { %174 = vmatpush2.msra.mxu0 %v87_v15 }
  0x48   :  { %175 = vmatprep.subr.mxu0 %v86_v16 }
  0x49   :  { %176 = vmatpush2.msra.mxu0 %v85_v17 }
  0x4a   :  { %177 = vmatprep.subr.mxu0 %v84_v18 }
  0x4b   :  { %178 = vmatpush2.msra.mxu0 %v83_v19 }
  0x4c   :  { %179 = vmatprep.subr.mxu0 %v82_v20 }
  0x4d   :  { %180 = vmatpush2.msra.mxu0 %v81_v21 }
  0x4e   :  { %181 = vmatprep.subr.mxu0 %v80_v22 }
  0x4f   :  { %182 = vmatpush2.msra.mxu0 %v79_v23 }
  0x50   :  { %183 = vmatprep.subr.mxu0 %v78_v24 }
  0x51   :  { %184 = vmatpush2.msra.mxu0 %v77_v25 }
  0x52   :  { %186 = vmatmul.mubr.f32.vlgmr.msra.gmra.mxu0 %v43_v26 }
 0x112   :  { %v187_v42 = vpop.f32.mrf.mxu0 }
 0x113   :  { %v188_v43 = vadd.f32 %v187_v42, %v114_v40 }
 0x114   :  { %v189_v44 = vpop.f32.mrf.mxu0 }
 0x115   :  { %v190_v45 = vadd.f32 %v189_v44, %v118_v41  ;;  %v192_v47 = vmax.f32 %v188_v43, 0.0 }
 0x117   :  { %v193_v46 = vmax.f32 %v190_v45, 0.0 }
 0x119   :  { %297 = vmatprep.mubr.f32.mxu1 %v193_v46 }
 0x11a   :  { %298 = vmatmul.mubr.f32.vlgmr.msra.gmra.mxu1 %v192_v47 }
 0x1da   :  { %v387_v48 = vpop.f32.mrf.mxu1 }
 0x1dc   :  { %v388_v50 = vpop.f32.mrf.mxu1 }
 0x1dd   :  { %v389_v51 = vadd.f32 %v388_v50, %v387_v48 }
 0x1df   :  { %v300_v52 = vadd.f32 %v389_v51, %v351_v49 }
 0x1e1   :  { %v303_v54 = vmax.f32 %v300_v52, 0.0 }
 0x1e3   :  { %v311_v55 = vmul.f32 %v352_v53, %v303_v54 }
 0x1e5   :  { %v313_v56 = vsel %vm312_vm0, %v311_v55, 0.0 }
 0x1e6   :  { %314 = vadd.xlane.f32.xlu0 %v313_v56 }
 0x26f   :  { %v315_v59 = vpop.xlane.xlu0 %314 }
 0x270   :  { %v323_v60 = vadd.f32 %v353_v58, %v315_v59 }
 0x272   :  { %v354_v61 = vmul.f32 -1.442695, %v323_v60 }
 0x274   :  { %396 = vpow2.f32 %v354_v61 }
 0x281   :  { %v397_v62 = vpop.eup %396 }
 0x282   :  { %v327_v63 = vadd.f32 1.0, %v397_v62 }
 0x284   :  { %398 = vrcp.f32 %v327_v63 }
 0x291   :  { %v399_v0 = vpop.eup %398 }
 0x292   :  { %332 = vperm.xlu0 %395, %v399_v0  }
 0x30d   :  { %v333_v1 = vpop.permute.xlu0 %332 }
 0x30e   :  { %335 = vst [vmem:[#allocation6] sm:$0xff] %v333_v1 }
 0x30f   :  { %431 = shalt.err (!%p428_p9)
}
 0x310   :  { %345 = dma.vmem_to_hbm [thread:$0]  %s343_s29, 128, %s616_s7, [#allocation5]  }
 0x311   :  { %442 = dma.done.wait [#allocation5], 128  }
 0x312   :  { %443 = vsyncadd [#allocation5], 4294967168 }
 0x313   :  { %349 = vsyncpa [#allocation4], 1 }
 0x314   :  { %350 = vsyncpa [#allocation5], 1 }

</bundles_post_ra>
